<compile_context>
chip_gen: v7x
topology: tpu7x:2x2x1
jax: 0.10.0
libtpu: 0.0.40
codegen_flags: <defaults>
</compile_context>

<pallas_src>
import functools

import jax
import jax.numpy as jnp
from jax.experimental import pallas as pl
from jax.experimental.pallas import tpu as pltpu


BN_EPS = 0.001                      # matches nn.BatchNorm1d(..., eps=0.001)
LANE = 128                          # TPU lane width (last-dim alignment)
VMEM_BUDGET_BYTES = 40 * 1024 * 1024   # tile-size budget (headroom below limit)
VMEM_LIMIT_BYTES = 48 * 1024 * 1024    # scoped VMEM limit (< 64 MiB v7x physical)


def _round_up(x, m):
    return -(-x // m) * m


def decoder_zinb_kernel(z_ref, lib_ref, w1_ref, b1_ref, wcat_ref, bcat_ref,
                        norm_ref, disp_ref, imp_ref, drop_ref, *, n_pad):
    N = n_pad

    # ---- decoder MLP layer: Linear (inference-mode BN folded into w1/b1) -> ReLU
    #      (Dropout is identity in eval mode).
    zb = z_ref[...].astype(jnp.bfloat16)
    h = jnp.dot(zb, w1_ref[...], preferred_element_type=jnp.float32) + b1_ref[...]
    latent = jnp.maximum(h, 0.0).astype(jnp.bfloat16)
    # TODO(synk): training-mode BatchNorm (batch statistics) and Dropout masking
    # are not reproduced; inference-mode semantics are used.

    # ---- fused output projections: (TILE_B, hidden) x (hidden, 3N) -> [scale | r | drop]
    out3 = jnp.dot(latent, wcat_ref[...],
                   preferred_element_type=jnp.float32) + bcat_ref[...]
    logits = out3[:, :N]          # decoder_scale (padded cols carry -1e30 bias)
    r_lin = out3[:, N:2 * N]      # decoder_r
    drop = out3[:, 2 * N:]        # dropout linear (raw logits, as in PyTorch)

    # ---- softmax(dim=1) over genes; denominator via EUP approx reciprocal
    m = jnp.max(logits, axis=-1, keepdims=True)
    e = jnp.exp(logits - m)                               # padded cols -> exactly 0
    inv = pl.reciprocal(jnp.sum(e, axis=-1, keepdims=True), approx=True)
    normalized = e * inv

    # ---- four direct lane-dense stores (no concatenate / no slab)
    norm_ref[...] = normalized
    disp_ref[...] = jnp.exp(r_lin)
    imp_ref[...] = jnp.exp(lib_ref[...]) * normalized
    drop_ref[...] = drop


def _resident_spec(shape):
    """BlockSpec for a grid-invariant (weight) operand: single-buffered when the
    installed Pallas supports pipeline_mode, else default double-buffering."""
    index_map = lambda i: (0, 0)
    if hasattr(pl, "Buffered"):
        try:
            return pl.BlockSpec(shape, index_map, pipeline_mode=pl.Buffered(1))
        except TypeError:
            pass
    return pl.BlockSpec(shape, index_map)


def choose_tile_b(batch, latent_pad, hidden_pad, n_pad,
                  vmem_budget=VMEM_BUDGET_BYTES, max_tile=512):
    """Pick the largest batch tile (multiple of 8, <= max_tile) that fits the
    VMEM budget, while keeping >= 2 grid steps so the 'parallel' axis can shard
    across both v7x TensorCores."""
    weight_bytes = (2 * hidden_pad * (latent_pad + 3 * n_pad)   # bf16 w1 + wcat
                    + 4 * (hidden_pad + 3 * n_pad))             # f32 b1 + bcat
    per_row = (8 * (latent_pad + 1)          # z + library, f32, double-buffered
               + 32 * n_pad                  # 4 f32 outputs, double-buffered
               + 4 * (hidden_pad + 6 * n_pad))  # in-flight f32 intermediates
    cap = (vmem_budget - weight_bytes) // per_row
    cap = int(max(8, min(cap, max_tile)))

    batch8 = _round_up(batch, 8)
    nb = -(-batch8 // cap)
    if batch8 > 8:
        nb = max(nb, 2)                      # keep both v7x cores busy
    tile = _round_up(-(-batch8 // nb), 8)
    return max(8, tile)


def prepare_params(raw):
    """One-time parameter transform: fold inference-mode BN into the first
    Linear, lane-pad every dimension to a multiple of 128, concatenate the
    three output projections, cast weights to bf16."""
    latent_dim, hidden = raw["w1"].shape
    input_size = raw["w_scale"].shape[1]
    latent_pad = _round_up(latent_dim, LANE)
    hidden_pad = _round_up(hidden, LANE)
    n_pad = _round_up(input_size, LANE)

    # Fold inference-mode BatchNorm1d into the first Linear.
    scale = raw["bn_gamma"] * jax.lax.rsqrt(raw["bn_var"] + BN_EPS)      # (1, hidden)
    w1 = raw["w1"] * scale
    b1 = (raw["b1"] - raw["bn_mean"]) * scale + raw["bn_beta"]

    # Zero-pad to lane-aligned shapes: padded hidden units are exactly zero
    # after ReLU, padded latent columns multiply zero weights.
    w1 = jnp.pad(w1, ((0, latent_pad - latent_dim), (0, hidden_pad - hidden)))
    b1 = jnp.pad(b1, ((0, 0), (0, hidden_pad - hidden)))

    def pad_out(w, b, bias_fill):
        w = jnp.pad(w, ((0, hidden_pad - hidden), (0, n_pad - input_size)))
        b = jnp.pad(b, ((0, 0), (0, n_pad - input_size)),
                    constant_values=jnp.float32(bias_fill))
        return w, b

    # Padded softmax (scale) columns get a -1e30 bias so exp() -> exactly 0.
    w_s, b_s = pad_out(raw["w_scale"], raw["b_scale"], -1e30)
    w_r, b_r = pad_out(raw["w_r"], raw["b_r"], 0.0)
    w_d, b_d = pad_out(raw["w_drop"], raw["b_drop"], 0.0)

    w_cat = jnp.concatenate([w_s, w_r, w_d], axis=1).astype(jnp.bfloat16)
    b_cat = jnp.concatenate([b_s, b_r, b_d], axis=1).astype(jnp.float32)

    return dict(
        w1=w1.astype(jnp.bfloat16), b1=b1.astype(jnp.float32),
        w_cat=w_cat, b_cat=b_cat,
        latent_dim=latent_dim, latent_pad=latent_pad,
        hidden_pad=hidden_pad, n=input_size, n_pad=n_pad,
    )


def decoder_zinb_forward(z, library, prep):
    """Runs the DecoderZINB forward pass; returns dict of 4 outputs."""
    batch, latent_dim = z.shape
    assert latent_dim == prep["latent_dim"]
    latent_pad, hidden_pad = prep["latent_pad"], prep["hidden_pad"]
    n, n_pad = prep["n"], prep["n_pad"]

    tile_b = choose_tile_b(batch, latent_pad, hidden_pad, n_pad)
    padded = _round_up(batch, tile_b)
    nb = padded // tile_b

    z = jnp.pad(z.astype(jnp.float32),
                ((0, padded - batch), (0, latent_pad - latent_dim)))
    library = jnp.pad(library.astype(jnp.float32), ((0, padded - batch), (0, 0)))

    kernel = functools.partial(decoder_zinb_kernel, n_pad=n_pad)
    out_sd = jax.ShapeDtypeStruct((padded, n_pad), jnp.float32)
    out_spec = lambda: pl.BlockSpec((tile_b, n_pad), lambda i: (i, 0))

    norm, disp, imp, drop = pl.pallas_call(
        kernel,
        out_shape=(out_sd, out_sd, out_sd, out_sd),
        grid=(nb,),
        in_specs=[
            pl.BlockSpec((tile_b, latent_pad), lambda i: (i, 0)),   # z
            pl.BlockSpec((tile_b, 1), lambda i: (i, 0)),            # library
            _resident_spec((latent_pad, hidden_pad)),               # w1 (BN folded)
            _resident_spec((1, hidden_pad)),                        # b1 (BN folded)
            _resident_spec((hidden_pad, 3 * n_pad)),                # [w_scale|w_r|w_drop]
            _resident_spec((1, 3 * n_pad)),                         # [b_scale|b_r|b_drop]
        ],
        out_specs=(out_spec(), out_spec(), out_spec(), out_spec()),
        compiler_params=pltpu.CompilerParams(
            dimension_semantics=("parallel",),
            vmem_limit_bytes=VMEM_LIMIT_BYTES),
    )(z, library, prep["w1"], prep["b1"], prep["w_cat"], prep["b_cat"])

    return dict(
        normalized=norm[:batch, :n],
        disperation=disp[:batch, :n],
        imputation=imp[:batch, :n],
        dropoutrate=drop[:batch, :n],
    )
    # TODO(synk): for very large gene counts (N ~ 10k-30k) add a feature-tile
    # grid axis with an online softmax so VMEM stays bounded on v7x (64 MiB).


def init_params(key, latent_dim, hidden, input_size):
    """Deterministic synthetic parameter init (weights stored as (in, out))."""
    ks = jax.random.split(key, 4)

    def lin(k, n_in, n_out):
        scale = 1.0 / jnp.sqrt(jnp.float32(n_in))
        kw, kb = jax.random.split(k)
        w = jax.random.uniform(kw, (n_in, n_out), jnp.float32, -scale, scale)
        b = jax.random.uniform(kb, (1, n_out), jnp.float32, -scale, scale)
        return w, b

    w1, b1 = lin(ks[0], latent_dim, hidden)
    ws, bs = lin(ks[1], hidden, input_size)
    wr, br = lin(ks[2], hidden, input_size)
    wd, bd = lin(ks[3], hidden, input_size)

    return dict(
        w1=w1, b1=b1,
        bn_gamma=jnp.ones((1, hidden), jnp.float32),
        bn_beta=jnp.zeros((1, hidden), jnp.float32),
        bn_mean=jnp.zeros((1, hidden), jnp.float32),
        bn_var=jnp.ones((1, hidden), jnp.float32),
        w_scale=ws, b_scale=bs,
        w_r=wr, b_r=br,
        w_drop=wd, b_drop=bd,
    )


def reference_forward(z, library, raw):
    """Pure-JAX f32 reference of the PyTorch forward (inference-mode BN/Dropout)."""
    scale = raw["bn_gamma"] * jax.lax.rsqrt(raw["bn_var"] + BN_EPS)
    h = z @ raw["w1"] + raw["b1"]
    h = (h - raw["bn_mean"]) * scale + raw["bn_beta"]
    latent = jnp.maximum(h, 0.0)
    logits = latent @ raw["w_scale"] + raw["b_scale"]
    normalized = jax.nn.softmax(logits, axis=1)
    return dict(
        normalized=normalized,
        disperation=jnp.exp(latent @ raw["w_r"] + raw["b_r"]),
        imputation=jnp.exp(library) * normalized,
        dropoutrate=latent @ raw["w_drop"] + raw["b_drop"],
    )


if __name__ == "__main__":
    # Module config: layer = [latent_dim, hidden] (len > 1 -> MLP branch taken)
    batch = 16
    latent_dim = 32
    hidden = 16
    input_size = 256

    key = jax.random.PRNGKey(0)
    k_z, k_lib, k_p = jax.random.split(key, 3)

    z = jax.random.normal(k_z, (batch, latent_dim), jnp.float32)
    library = jax.random.normal(k_lib, (batch, 1), jnp.float32) * 0.1
    raw_params = init_params(k_p, latent_dim, hidden, input_size)
    prep = prepare_params(raw_params)

    out = decoder_zinb_forward(z, library, prep)
    jax.block_until_ready(out)

    ref = reference_forward(z, library, raw_params)

    for name in ("normalized", "disperation", "imputation", "dropoutrate"):
        assert out[name].shape == (batch, input_size), name
        assert bool(jnp.all(jnp.isfinite(out[name]))), name
        assert bool(jnp.allclose(out[name], ref[name], rtol=5e-2, atol=1e-2)), name

    row_sums = jnp.sum(out["normalized"], axis=1)
    assert bool(jnp.allclose(row_sums, jnp.ones((batch,)), atol=5e-3))
    assert bool(jnp.all(out["disperation"] > 0.0))

    print("KERNEL_OK")
</pallas_src>

<mosaic_0001>
module attributes {stable_mosaic.version = 11 : i64} {
  func.func @decoder_zinb_kernel(%arg0: i32, %arg1: memref<8x128xf32, #tpu.memory_space<vmem>>, %arg2: memref<8x1xf32, #tpu.memory_space<vmem>>, %arg3: memref<128x128xbf16, #tpu.memory_space<vmem>>, %arg4: memref<1x128xf32, #tpu.memory_space<vmem>>, %arg5: memref<128x768xbf16, #tpu.memory_space<vmem>>, %arg6: memref<1x768xf32, #tpu.memory_space<vmem>>, %arg7: memref<8x256xf32, #tpu.memory_space<vmem>>, %arg8: memref<8x256xf32, #tpu.memory_space<vmem>>, %arg9: memref<8x256xf32, #tpu.memory_space<vmem>>, %arg10: memref<8x256xf32, #tpu.memory_space<vmem>>) attributes {dimension_semantics = [#tpu.dimension_semantics<parallel>], iteration_bounds = array<i64: 2>, scalar_prefetch = 0 : i64, scratch_operands = 0 : i64, tpu.core_type = #tpu.core_type<tc>, window_params = [{transform_indices = @transform_0, window_bounds = array<i64: 8, 128>}, {transform_indices = @transform_1, window_bounds = array<i64: 8, 1>}, {pipeline_mode = #tpu.pipeline_mode<synchronous>, transform_indices = @transform_2, window_bounds = array<i64: 128, 128>}, {pipeline_mode = #tpu.pipeline_mode<synchronous>, transform_indices = @transform_3, window_bounds = array<i64: 1, 128>}, {pipeline_mode = #tpu.pipeline_mode<synchronous>, transform_indices = @transform_4, window_bounds = array<i64: 128, 768>}, {pipeline_mode = #tpu.pipeline_mode<synchronous>, transform_indices = @transform_5, window_bounds = array<i64: 1, 768>}, {transform_indices = @transform_6, window_bounds = array<i64: 8, 256>}, {transform_indices = @transform_7, window_bounds = array<i64: 8, 256>}, {transform_indices = @transform_8, window_bounds = array<i64: 8, 256>}, {transform_indices = @transform_9, window_bounds = array<i64: 8, 256>}]} {
    %c0 = arith.constant 0 : index
    %c0_0 = arith.constant 0 : index
    %0 = vector.load %arg1[%c0, %c0_0] : memref<8x128xf32, #tpu.memory_space<vmem>>, vector<8x128xf32>
    %1 = arith.truncf %0 : vector<8x128xf32> to vector<8x128xbf16>
    %c0_1 = arith.constant 0 : index
    %c0_2 = arith.constant 0 : index
    %2 = vector.load %arg3[%c0_1, %c0_2] : memref<128x128xbf16, #tpu.memory_space<vmem>>, vector<128x128xbf16>
    %cst = arith.constant dense<0.000000e+00> : vector<8x128xf32>
    %3 = tpu.matmul %1, %2, %cst {dimension_numbers = #tpu.dot_dimension_numbers<[1], [0], [0], [1], [0, 0, 1, 1], [], []>} : vector<8x128xbf16>, vector<128x128xbf16>, vector<8x128xf32> -> vector<8x128xf32>
    %c0_3 = arith.constant 0 : index
    %c0_4 = arith.constant 0 : index
    %4 = vector.load %arg4[%c0_3, %c0_4] : memref<1x128xf32, #tpu.memory_space<vmem>>, vector<1x128xf32>
    %5 = vector.broadcast %4 : vector<1x128xf32> to vector<8x128xf32>
    %6 = arith.addf %3, %5 : vector<8x128xf32>
    %cst_5 = arith.constant 0.000000e+00 : f32
    %7 = vector.broadcast %cst_5 : f32 to vector<8x128xf32>
    %8 = arith.maximumf %6, %7 : vector<8x128xf32>
    %9 = arith.truncf %8 : vector<8x128xf32> to vector<8x128xbf16>
    %c0_6 = arith.constant 0 : index
    %c0_7 = arith.constant 0 : index
    %10 = vector.load %arg5[%c0_6, %c0_7] : memref<128x768xbf16, #tpu.memory_space<vmem>>, vector<128x768xbf16>
    %cst_8 = arith.constant dense<0.000000e+00> : vector<8x768xf32>
    %11 = tpu.matmul %9, %10, %cst_8 {dimension_numbers = #tpu.dot_dimension_numbers<[1], [0], [0], [1], [0, 0, 1, 1], [], []>} : vector<8x128xbf16>, vector<128x768xbf16>, vector<8x768xf32> -> vector<8x768xf32>
    %c0_9 = arith.constant 0 : index
    %c0_10 = arith.constant 0 : index
    %12 = vector.load %arg6[%c0_9, %c0_10] : memref<1x768xf32, #tpu.memory_space<vmem>>, vector<1x768xf32>
    %13 = vector.broadcast %12 : vector<1x768xf32> to vector<8x768xf32>
    %14 = arith.addf %11, %13 : vector<8x768xf32>
    %15 = vector.extract_strided_slice %14 {offsets = [0, 0], sizes = [8, 256], strides = [1, 1]} : vector<8x768xf32> to vector<8x256xf32>
    %16 = vector.extract_strided_slice %14 {offsets = [0, 256], sizes = [8, 256], strides = [1, 1]} : vector<8x768xf32> to vector<8x256xf32>
    %17 = vector.extract_strided_slice %14 {offsets = [0, 512], sizes = [8, 256], strides = [1, 1]} : vector<8x768xf32> to vector<8x256xf32>
    %cst_11 = arith.constant dense<0xFF800000> : vector<8xf32>
    %18 = vector.multi_reduction <maximumf>, %15, %cst_11 [1] : vector<8x256xf32> to vector<8xf32>
    %19 = vector.shape_cast %18 : vector<8xf32> to vector<8x1xf32>
    %20 = vector.broadcast %19 : vector<8x1xf32> to vector<8x256xf32>
    %21 = arith.subf %15, %20 : vector<8x256xf32>
    %22 = math.exp %21 : vector<8x256xf32>
    %cst_12 = arith.constant dense<0.000000e+00> : vector<8xf32>
    %23 = vector.multi_reduction <add>, %22, %cst_12 [1] : vector<8x256xf32> to vector<8xf32>
    %24 = vector.shape_cast %23 : vector<8xf32> to vector<8x1xf32>
    %25 = tpu.reciprocal %24 {approx = true} : vector<8x1xf32> -> vector<8x1xf32>
    %26 = vector.broadcast %25 : vector<8x1xf32> to vector<8x256xf32>
    %27 = arith.mulf %22, %26 : vector<8x256xf32>
    %c0_13 = arith.constant 0 : index
    %c0_14 = arith.constant 0 : index
    %28 = vector.load %arg7[%c0_13, %c0_14] : memref<8x256xf32, #tpu.memory_space<vmem>>, vector<8x256xf32>
    tpu.vector_store %arg7[%c0_13, %c0_14], %27 {strides = array<i32>} : memref<8x256xf32, #tpu.memory_space<vmem>>, vector<8x256xf32>,
    %29 = math.exp %16 : vector<8x256xf32>
    %c0_15 = arith.constant 0 : index
    %c0_16 = arith.constant 0 : index
    %30 = vector.load %arg8[%c0_15, %c0_16] : memref<8x256xf32, #tpu.memory_space<vmem>>, vector<8x256xf32>
    tpu.vector_store %arg8[%c0_15, %c0_16], %29 {strides = array<i32>} : memref<8x256xf32, #tpu.memory_space<vmem>>, vector<8x256xf32>,
    %c0_17 = arith.constant 0 : index
    %c0_18 = arith.constant 0 : index
    %31 = vector.load %arg2[%c0_17, %c0_18] : memref<8x1xf32, #tpu.memory_space<vmem>>, vector<8x1xf32>
    %32 = math.exp %31 : vector<8x1xf32>
    %33 = vector.broadcast %32 : vector<8x1xf32> to vector<8x256xf32>
    %34 = arith.mulf %33, %27 : vector<8x256xf32>
    %c0_19 = arith.constant 0 : index
    %c0_20 = arith.constant 0 : index
    %35 = vector.load %arg9[%c0_19, %c0_20] : memref<8x256xf32, #tpu.memory_space<vmem>>, vector<8x256xf32>
    tpu.vector_store %arg9[%c0_19, %c0_20], %34 {strides = array<i32>} : memref<8x256xf32, #tpu.memory_space<vmem>>, vector<8x256xf32>,
    %c0_21 = arith.constant 0 : index
    %c0_22 = arith.constant 0 : index
    %36 = vector.load %arg10[%c0_21, %c0_22] : memref<8x256xf32, #tpu.memory_space<vmem>>, vector<8x256xf32>
    tpu.vector_store %arg10[%c0_21, %c0_22], %17 {strides = array<i32>} : memref<8x256xf32, #tpu.memory_space<vmem>>, vector<8x256xf32>,
    return
  }
  func.func @transform_0(%arg0: i32) -> (i32, i32) {
    %c0_i32 = arith.constant 0 : i32
    %c0_i32_0 = arith.constant 0 : i32
    return %arg0, %c0_i32 : i32, i32
  }
  func.func @transform_1(%arg0: i32) -> (i32, i32) {
    %c0_i32 = arith.constant 0 : i32
    %c0_i32_0 = arith.constant 0 : i32
    return %arg0, %c0_i32 : i32, i32
  }
  func.func @transform_2(%arg0: i32) -> (i32, i32) {
    %c0_i32 = arith.constant 0 : i32
    %c0_i32_0 = arith.constant 0 : i32
    %c0_i32_1 = arith.constant 0 : i32
    return %c0_i32, %c0_i32_0 : i32, i32
  }
  func.func @transform_3(%arg0: i32) -> (i32, i32) {
    %c0_i32 = arith.constant 0 : i32
    %c0_i32_0 = arith.constant 0 : i32
    %c0_i32_1 = arith.constant 0 : i32
    return %c0_i32, %c0_i32_0 : i32, i32
  }
  func.func @transform_4(%arg0: i32) -> (i32, i32) {
    %c0_i32 = arith.constant 0 : i32
    %c0_i32_0 = arith.constant 0 : i32
    %c0_i32_1 = arith.constant 0 : i32
    return %c0_i32, %c0_i32_0 : i32, i32
  }
  func.func @transform_5(%arg0: i32) -> (i32, i32) {
    %c0_i32 = arith.constant 0 : i32
    %c0_i32_0 = arith.constant 0 : i32
    %c0_i32_1 = arith.constant 0 : i32
    return %c0_i32, %c0_i32_0 : i32, i32
  }
  func.func @transform_6(%arg0: i32) -> (i32, i32) {
    %c0_i32 = arith.constant 0 : i32
    %c0_i32_0 = arith.constant 0 : i32
    return %arg0, %c0_i32 : i32, i32
  }
  func.func @transform_7(%arg0: i32) -> (i32, i32) {
    %c0_i32 = arith.constant 0 : i32
    %c0_i32_0 = arith.constant 0 : i32
    return %arg0, %c0_i32 : i32, i32
  }
  func.func @transform_8(%arg0: i32) -> (i32, i32) {
    %c0_i32 = arith.constant 0 : i32
    %c0_i32_0 = arith.constant 0 : i32
    return %arg0, %c0_i32 : i32, i32
  }
  func.func @transform_9(%arg0: i32) -> (i32, i32) {
    %c0_i32 = arith.constant 0 : i32
    %c0_i32_0 = arith.constant 0 : i32
    return %arg0, %c0_i32 : i32, i32
  }
}

</mosaic_0001>

<bundles_post_ra>
// kernel: tpu_custom_call.1
= control target key start
LH: loop header
LB: loop body
LE: loop exit
PB: predicated region body
PF: predicated region fallthrough
CT: control target
= control target key end

     0   :  { %15 = vsyncpa [#allocation3], 0  ;;  %s2143_s0 = inlined_call_operand.vmem [shape: f32[16,128], index: 0, kind: input, shape index: {}]   ;;  %s2144_s1 = inlined_call_operand.vmem [shape: f32[16,1], index: 1, kind: input, shape index: {}]   ;;  %s2145_s2 = inlined_call_operand.hbm [shape: bf16[128,128], index: 2, kind: input, shape index: {}]   ;;  %s2146_s3 = inlined_call_operand.vmem [shape: f32[1,128], index: 3, kind: input, shape index: {}]   ;;  %s2147_s4 = inlined_call_operand.hbm [shape: bf16[128,768], index: 4, kind: input, shape index: {}]   ;;  %s2148_s5 = inlined_call_operand.vmem [shape: f32[1,768], index: 5, kind: input, shape index: {}]   ;;  %s2149_s6 = inlined_call_operand.hbm [shape: f32[16,256], index: 6, kind: output, shape index: {0}]   ;;  %s2150_s7 = inlined_call_operand.hbm [shape: f32[16,256], index: 7, kind: output, shape index: {1}]   ;;  %s2151_s8 = inlined_call_operand.hbm [shape: f32[16,256], index: 8, kind: output, shape index: {2}]   ;;  %s2152_s9 = inlined_call_operand.hbm [shape: f32[16,256], index: 9, kind: output, shape index: {3}]  }
   0x1   :  { %16 = vsyncpa [#allocation6], 0 }
   0x2   :  { %17 = vsyncpa [#allocation4], 0 }
   0x3   :  { %19 = vsyncpa [#allocation4 + $0x1], 0 }
   0x4   :  { %20 = vsyncpa [#allocation9], 0 }
   0x5   :  { %22 = vsyncpa [#allocation9 + $0x1], 0 }
   0x6   :  { %23 = vsyncpa [#allocation12], 0 }
   0x7   :  { %25 = vsyncpa [#allocation12 + $0x1], 0  ;;  %s1834_s30 = smov 0   ;;  %s1836_s10 = smov 0  }
   0x8   :  { %s1838_s11 = smov 0   ;;  %s1840_s12 = smov 0  }
   0x9 LB: > { %2160 = sst [smem:[#allocation18_spill]] %s1765_s11  ;;  %s1855_s13 = sadd.s32 4294967295, %s1769_s12   ;;  %s1769_s12 = sphi %s1840_s12, %s2175_s12   ;;  %s1765_s11 = sphi %s1838_s11, %s2177_s11   ;;  %s1761_s10 = sphi %s1836_s10, %s2179_s10   ;;  %s1757_s30 = sphi %s1834_s30, %s2178_s30  }
   0xa   : > { %s2153_s14 = sadd.s32 4294967294, %s1769_s12   ;;  %s1859_s15 = sadd.s32 1, %s1769_s12  }
   0xb   : > { %2161 = sst [smem:[#allocation19_spill]] %s1859_s15  ;;  %s174_s16 = sadd.s32 1, %s1765_s11 }
   0xc   : > { %s171_s17 = ssub.s32 %s1769_s12, %s1859_s15  ;;  %p184_p0 = scmp.ne.s32.totalorder %s1765_s11, %s1761_s10 }
   0xd   : > { %p172_p1 = scmp.eq.s32.totalorder %s171_s17, 0  ;;  %p185_p2 = scmp.eq.s32.totalorder %s1855_s13, 1 }
   0xe   : > { %p190_p3 = scmp.ne.s32.totalorder %s1761_s10, %s1757_s30  ;;  %p191_p4 = scmp.eq.s32.totalorder %s2153_s14, 1 }
   0xf   : > { %s1872_s18 = scalar_select %p172_p1, %s1765_s11, %s174_s16  }
  0x10   : > { %p1874_p5 = por %p185_p2, %p184_p0  ;;  %p1878_p6 = por %p191_p4, %p190_p3 }
  0x11   : > { %2162 = sst [smem:[#allocation20_spill]] %s1872_s18  ;;  %p1258_p7 = scmp.ge.s32.totalorder %s1769_s12, 1 }
  0x12   : > { %s2163_s19 = scalar_select %p1874_p5, 1, 0 }
  0x13   : > { %s2164_s20 = scalar_select %p1878_p6, 1, 0 }
  0x14   : > { %p276_p8 = scmp.lt.s32.totalorder %s1769_s12, 3  ;;  %p2154_p9 = scmp.eq.s32.totalorder %s1855_s13, 0 }
  0x15   : > { %s1771_s22 = smov [#allocation2]   ;;  %s1772_s25 = smov [#allocation5]  }
  0x16   : > { %p1885_p10 = pnand %p1258_p7, %p276_p8  ;;  %s288_s23 = sshll.u32 %s1771_s22, 4  ;;  %s289_s23 = int_to_ptr.vmem [resolvable:$true] %s288_s23 }
  0x17   : > { %s304_s26 = sshll.u32 %s1772_s25, 4  ;;  %s1551_s29 = scalar_lea.hbm %s2145_s2, 1024  ;;  %s1897_s26 = int_to_ptr.vmem [resolvable:$true] %s304_s26 }
  0x18   : > { %s2165_s21 = scalar_select %p1885_p10, 1, 0 }
  0x19   : > { %p1391_p11 = pneg %p1885_p10  ;;  %p1552_p13 = scmp.ne.s32.totalorder %s2145_s2, %s1551_s29 }
  0x1a   : > { %p1558_p3 = scmp.lt.u32.totalorder %s1551_s29, %s2145_s2 }
  0x1b   : > { %p1893_p12 = pnand %p2154_p9, %p1391_p11 }
  0x1d   : > { %p1553_p0 = pneg %p1893_p12 }
  0x1f   : > { %p1554_p1 = pnand %p1553_p0, %p1552_p13 }
  0x21   : > { %p1555_p2 = pneg %p1554_p1 }
  0x23   : > { %p1560_p4 = pnand %p1558_p3, %p1555_p2 }
  0x25   : > { %1563 = shalt.err (!%p1560_p4)
}
  0x26   : > { %s1564_s25 = scalar_lea.vmem %s289_s23, 1024  ;;  %p1572_p9 = scmp.lt.s32.totalorder %s289_s23, %s289_s23 }
  0x27   : > { %p1565_p7 = scmp.ne.s32.totalorder %s289_s23, %s1564_s25  ;;  %p1573_p6 = scmp.lt.s32.totalorder %s1564_s25, %s1564_s25 }
  0x29   : > { %p1567_p8 = pnand %p1565_p7, %p1553_p0  ;;  %p1574_p5 = por %p1573_p6, %p1572_p9 }
  0x2b   : > { %p1568_p11 = pneg %p1567_p8 }
  0x2d   : > { %p1575_p10 = pnand %p1574_p5, %p1568_p11 }
  0x2f   : > { %1578 = shalt.err (!%p1575_p10)
}
  0x30   : > { %s1773_s27 = smov 64   ;;  %s1774_s28 = smov 4  }
  0x31   : > { %1394 = dma.hbm_to_vmem [thread:$0]  (!%p1893_p12), %s2145_s2, 1024, %s289_s23, [#allocation3], %s1773_s27, %s1773_s27, %s1774_s28  }
  0x32   : > { %s1579_s22 = scalar_lea.hbm %s2147_s4, 6144 }
  0x33   : > { %p1580_p13 = scmp.ne.s32.totalorder %s2147_s4, %s1579_s22  ;;  %p1586_p9 = scmp.lt.u32.totalorder %s1579_s22, %s2147_s4 }
  0x35   : > { %p1582_p5 = pnand %p1580_p13, %p1553_p0 }
  0x37   : > { %p1583_p6 = pneg %p1582_p5 }
  0x39   : > { %p1588_p10 = pnand %p1586_p9, %p1583_p6 }
  0x3b   : > { %1591 = shalt.err (!%p1588_p10)
}
  0x3c   : > { %s1592_s23 = scalar_lea.vmem %s1897_s26, 6144  ;;  %p1600_p4 = scmp.lt.s32.totalorder %s1897_s26, %s1897_s26 }
  0x3d   : > { %p1593_p1 = scmp.ne.s32.totalorder %s1897_s26, %s1592_s23  ;;  %p1601_p7 = scmp.lt.s32.totalorder %s1592_s23, %s1592_s23 }
  0x3f   : > { %p1595_p2 = pnand %p1593_p1, %p1553_p0  ;;  %p1602_p8 = por %p1601_p7, %p1600_p4 }
  0x41   : > { %p1596_p3 = pneg %p1595_p2 }
  0x43   : > { %p1603_p11 = pnand %p1602_p8, %p1596_p3 }
  0x45   : > { %1606 = shalt.err (!%p1603_p11)
}
  0x46   : > { %s1775_s11 = smov 384   ;;  %s1776_s15 = smov 24  }
  0x47   : > { %1397 = dma.hbm_to_vmem [thread:$0]  (!%p1893_p12), %s2147_s4, 6144, %s1897_s26, [#allocation6], %s1775_s11, %s1775_s11, %s1776_s15  }
  0x48   : > { %p2167_p13 = scmp.ne.s32.totalorder %s2165_s21, 0 }
  0x49   : > { %p2168_p0 = scmp.eq.s32.totalorder (!%p2167_p13), %s1855_s13, 0 }
  0x4a   : > { %337 = sbr.rel (%p2167_p13) target bundleno = 904 (0x388), region = 44 }
  0x51   : > { %1736 = dma.done.wait (%p2168_p0), [#allocation3], 1024   ;;  %p2169_p5 = pmov %p2168_p0 }
  0x52   : > { %p2170_p6 = pmov %p2168_p0 }
  0x53   : > { %1738 = vsyncadd (%p2169_p5), [#allocation3], 4294966272 }
  0x54   : > { %1740 = dma.done.wait (%p2170_p6), [#allocation6], 6144   ;;  %p2171_p9 = pmov %p2168_p0 }
  0x55   : > { %v1777_v0 = vmov 0.0   ;;  %vm1778_vm0 = vmmov 0   ;;  %v1459_v1 = vld [vmem:[#allocation2] sm:$0xff]   ;;  %v1460_v2 = vld [vmem:[#allocation2 + $0x8] sm:$0xff]   ;;  %v1461_v3 = vld [vmem:[#allocation2 + $0x10] sm:$0xff]   ;;  %p395_p12 = scmp.lt.s32.totalorder %s1855_s13, 1 }
  0x56   : > { %1742 = vsyncadd (%p2171_p9), [#allocation6], 4294961152  ;;  %1355 = vmatprep.subr.bf16.mxu0 %v1777_v0  ;;  %1371 = vmatprep.mubr.msk.bf16.mxu0 %vm1778_vm0, %v1777_v0  ;;  %v1467_v4 = vld [vmem:[#allocation5 + $0x4] ss:$24 sps:$4 sm:$0xff]   ;;  %v1469_v6 = vld [vmem:[#allocation5] ss:$24 sps:$4 sm:$0xff]  }
  0x57   : > { %1356 = vmatpush3.bf16.msra.mxu0 %v1459_v1  ;;  %v1462_v5 = vld [vmem:[#allocation2 + $0x18] sm:$0xff]   ;;  %839 = vmatprep.subr.bf16.mxu1 %v1467_v4  ;;  %v1473_v7 = vld [vmem:[#allocation5 + $0x34] ss:$24 sps:$4 sm:$0xff]   ;;  %v1475_v8 = vld [vmem:[#allocation5 + $0x30] ss:$24 sps:$4 sm:$0xff]   ;;  %s1958_s21 = scalar_select %p395_p12, %s1855_s13, 1 }
  0x58   : > { %1357 = vmatprep.subr.bf16.mxu0 %v1777_v0  ;;  %840 = vmatpush1.bf16.msra.mxu1 %v1469_v6  ;;  %v1463_v9 = vld [vmem:[#allocation2 + $0x20] sm:$0xff]   ;;  %v1485_v12 = vld [vmem:[#allocation5 + $0x94] ss:$24 sps:$4 sm:$0xff]   ;;  %v1487_v14 = vld [vmem:[#allocation5 + $0x90] ss:$24 sps:$4 sm:$0xff]   ;;  %v1779_v47 = vmov 0  }
  0x59   : > { %841 = vmatprep.subr.bf16.mxu1 %v1473_v7  ;;  %v1479_v10 = vld [vmem:[#allocation5 + $0x64] ss:$24 sps:$4 sm:$0xff]   ;;  %v1481_v11 = vld [vmem:[#allocation5 + $0x60] ss:$24 sps:$4 sm:$0xff]   ;;  %v1464_v13 = vld [vmem:[#allocation2 + $0x28] sm:$0xff]   ;;  %s1269_s24 = sshll.u32 %s1958_s21, 3  ;;  %871 = vmatprep.mubr.bf16.mxu1 %v1779_v47  ;;  %v569_v7 = vlaneseq }
  0x5a   : > { %v1491_v15 = vld [vmem:[#allocation5 + $0xc4] ss:$24 sps:$4 sm:$0xff]   ;;  %v1465_v16 = vld [vmem:[#allocation2 + $0x30] sm:$0xff]   ;;  %s398_s14 = scalar_lea.vmem %s2143_s0, %s1269_s24  ;;  %v1493_v18 = vld [vmem:[#allocation5 + $0xc0] ss:$24 sps:$4 sm:$0xff]   ;;  %s402_s17 = scalar_lea.vmem %s2144_s1, %s1269_s24  ;;  %1457 = vset.pattern.permute.xlu1 %v1779_v47  ;;  %1458 = vset.pattern.permute.xlu0 %v1779_v47 }
  0x5b   : > { %1358 = vmatpush3.bf16.msra.mxu0 %v1460_v2  ;;  %v1466_v17 = vld [vmem:[#allocation2 + $0x38] sm:$0xff]   ;;  %v404_v19 = vld [vmem:[%s398_s14] sm:$0xff]  ;;  %v1497_v20 = vld [vmem:[#allocation5 + $0xf4] ss:$24 sps:$4 sm:$0xff]   ;;  %s1978_s15 = sand.u32 1, %s1761_s10   ;;  %s1004_s24 = sand.u32 1, %s1855_s13  }
  0x5c   : > { %1359 = vmatprep.subr.bf16.mxu0 %v1777_v0  ;;  %842 = vmatpush1.bf16.msra.mxu1 %v1475_v8  ;;  %v1472_v21 = vld [vmem:[#allocation5 + $0xc] ss:$24 sps:$4 sm:$0xff]   ;;  %v1499_v22 = vld [vmem:[#allocation5 + $0xf0] ss:$24 sps:$4 sm:$0xff]   ;;  %v405_v25 = vpack.c.bf16 %v404_v19, %v404_v19  ;;  %v1478_v26 = vld [vmem:[#allocation5 + $0x3c] ss:$24 sps:$4 sm:$0xff]  }
  0x5d   : > { %843 = vmatprep.subr.bf16.mxu1 %v1479_v10  ;;  %v1503_v23 = vld [vmem:[#allocation5 + $0x124] ss:$24 sps:$4 sm:$0xff]   ;;  %v1470_v24 = vld [vmem:[#allocation5 + $0x8] ss:$24 sps:$4 sm:$0xff]   ;;  %v1476_v28 = vld [vmem:[#allocation5 + $0x38] ss:$24 sps:$4 sm:$0xff]  }
  0x5e   : > { %v1505_v27 = vld [vmem:[#allocation5 + $0x120] ss:$24 sps:$4 sm:$0xff]   ;;  %v1484_v29 = vld [vmem:[#allocation5 + $0x6c] ss:$24 sps:$4 sm:$0xff]   ;;  %v1490_v31 = vld [vmem:[#allocation5 + $0x9c] ss:$24 sps:$4 sm:$0xff]  }
  0x5f   : > { %1360 = vmatpush3.bf16.msra.mxu0 %v1461_v3  ;;  %v1482_v30 = vld [vmem:[#allocation5 + $0x68] ss:$24 sps:$4 sm:$0xff]   ;;  %v1488_v32 = vld [vmem:[#allocation5 + $0x98] ss:$24 sps:$4 sm:$0xff]   ;;  %v1496_v33 = vld [vmem:[#allocation5 + $0xcc] ss:$24 sps:$4 sm:$0xff]  }
  0x60   : > { %1361 = vmatprep.subr.bf16.mxu0 %v1777_v0  ;;  %844 = vmatpush1.bf16.msra.mxu1 %v1481_v11  ;;  %v1494_v34 = vld [vmem:[#allocation5 + $0xc8] ss:$24 sps:$4 sm:$0xff]   ;;  %v1502_v35 = vld [vmem:[#allocation5 + $0xfc] ss:$24 sps:$4 sm:$0xff]   ;;  %v1500_v36 = vld [vmem:[#allocation5 + $0xf8] ss:$24 sps:$4 sm:$0xff]  }
  0x61   : > { %845 = vmatprep.subr.bf16.mxu1 %v1485_v12  ;;  %v1508_v37 = vld [vmem:[#allocation5 + $0x12c] ss:$24 sps:$4 sm:$0xff]   ;;  %v1506_v38 = vld [vmem:[#allocation5 + $0x128] ss:$24 sps:$4 sm:$0xff]   ;;  %v1514_v43 = vld [vmem:[#allocation5 + $0x15c] ss:$24 sps:$4 sm:$0xff]  }
  0x62   : > { %v985_v39 = vld [vmem:[%s402_s17] sm:$0xff]  ;;  %v1509_v41 = vld [vmem:[#allocation5 + $0x154] ss:$24 sps:$4 sm:$0xff]   ;;  %v1511_v42 = vld [vmem:[#allocation5 + $0x150] ss:$24 sps:$4 sm:$0xff]   ;;  %v570_v8 = vshrl.u32 %v569_v7, 7 }
  0x63   : > { %1362 = vmatpush3.bf16.msra.mxu0 %v1462_v5  ;;  %v986_v40 = vmul.f32 1.442695, %v985_v39  ;;  %v1512_v44 = vld [vmem:[#allocation5 + $0x158] ss:$24 sps:$4 sm:$0xff]   ;;  %v1517_v45 = vld [vmem:[#allocation5 + $0x14] ss:$24 sps:$4 sm:$0xff]  }
  0x64   : > { %1363 = vmatprep.subr.bf16.mxu0 %v1777_v0  ;;  %846 = vmatpush1.bf16.msra.mxu1 %v1487_v14  ;;  %v1271_v48 = vld [vmem:[%s2146_s3] ss:$0 sm:$0xff]  ;;  %v1515_v55 = vld [vmem:[#allocation5 + $0x10] ss:$24 sps:$4 sm:$0xff]   ;;  %v1520_v57 = vld [vmem:[#allocation5 + $0x44] ss:$24 sps:$4 sm:$0xff]  }
  0x65   : > { %847 = vmatprep.subr.bf16.mxu1 %v1491_v15  ;;  %1539 = vpow2.f32 %v986_v40  ;;  %v1518_v58 = vld [vmem:[#allocation5 + $0x40] ss:$24 sps:$4 sm:$0xff]   ;;  %v1523_v59 = vld [vmem:[#allocation5 + $0x74] ss:$24 sps:$4 sm:$0xff]   ;;  %v1521_v60 = vld [vmem:[#allocation5 + $0x70] ss:$24 sps:$4 sm:$0xff]  }
  0x66   : > { %v1526_v61 = vld [vmem:[#allocation5 + $0xa4] ss:$24 sps:$4 sm:$0xff]   ;;  %v1524_v62 = vld [vmem:[#allocation5 + $0xa0] ss:$24 sps:$4 sm:$0xff]   ;;  %v1529_v63 = vld [vmem:[#allocation5 + $0xd4] ss:$24 sps:$4 sm:$0xff]  }
  0x67   : > { %1364 = vmatpush3.bf16.msra.mxu0 %v1463_v9  ;;  %v1532_v1 = vld [vmem:[#allocation5 + $0x104] ss:$24 sps:$4 sm:$0xff]   ;;  %v1530_v2 = vld [vmem:[#allocation5 + $0x100] ss:$24 sps:$4 sm:$0xff]   ;;  %v1535_v3 = vld [vmem:[#allocation5 + $0x134] ss:$24 sps:$4 sm:$0xff]  }
  0x68   : > { %1365 = vmatprep.subr.bf16.mxu0 %v1777_v0  ;;  %848 = vmatpush1.bf16.msra.mxu1 %v1493_v18  ;;  %v1533_v4 = vld [vmem:[#allocation5 + $0x130] ss:$24 sps:$4 sm:$0xff]   ;;  %v1538_v5 = vld [vmem:[#allocation5 + $0x164] ss:$24 sps:$4 sm:$0xff]   ;;  %v1536_v6 = vld [vmem:[#allocation5 + $0x160] ss:$24 sps:$4 sm:$0xff]  }
  0x69   : > { %849 = vmatprep.subr.bf16.mxu1 %v1497_v20  ;;  %v571_v9 = vsub.s32 0, %v570_v8  ;;  %v579_v10 = vsub.s32 2, %v570_v8  ;;  %v567_v11 = vld [vmem:[%s2148_s5] sm:$0x3f]  ;;  %v575_v12 = vsub.s32 1, %v570_v8  ;;  %s1981_s18 = sshll.u32 %s1978_s15, 4 }
  0x6a   : > { %s1984_s27 = scalar_lea.vmem [#allocation8], %s1981_s18  ;;  %s1989_s21 = scalar_lea.vmem [#allocation11], %s1981_s18 }
  0x6b   : > { %1366 = vmatpush3.bf16.msra.mxu0 %v1464_v13  ;;  %v583_v13 = vsub.s32 3, %v570_v8  ;;  %v572_v14 = vrot.slane %v567_v11, %v571_v9  ;;  %v580_v15 = vrot.slane %v567_v11, %v579_v10  ;;  %s2001_s26 = sshll.u32 %s1855_s13, 8  ;;  %s1043_s16 = sshll.u32 %s1984_s27, 4  ;;  %s1044_s16 = int_to_ptr.vmem [resolvable:$true] %s1043_s16 }
  0x6c   : > { %1367 = vmatprep.subr.bf16.mxu0 %v1777_v0  ;;  %850 = vmatpush1.bf16.msra.mxu1 %v1499_v22  ;;  %s2007_s29 = scalar_lea.hbm %s2150_s7, %s2001_s26  ;;  %s2010_s17 = scalar_lea.sflag [#allocation9], %s1004_s24 }
  0x6d   : > { %851 = vmatprep.subr.bf16.mxu1 %v1503_v23  ;;  %s1607_s22 = scalar_lea.vmem %s1044_s16, 256  ;;  %p2172_p1 = scmp.ne.s32.totalorder %s2163_s19, 0 }
  0x6e   : > { %p1608_p10 = scmp.ne.s32.totalorder %s1044_s16, %s1607_s22  ;;  %s1780_s25 = smov [#allocation8]  }
  0x6f   : > { %1368 = vmatpush3.bf16.msra.mxu0 %v1465_v16  ;;  %v1540_v46 = vpop.eup %1539  ;;  %v576_v16 = vrot.slane %v567_v11, %v575_v12  ;;  %s1611_s23 = sshll.u32 %s1780_s25, 4  ;;  %s1612_s23 = int_to_ptr.vmem [resolvable:$false] %s1611_s23 }
  0x70   : > { %1369 = vmatprep.subr.bf16.mxu0 %v1777_v0  ;;  %852 = vmatpush1.bf16.msra.mxu1 %v1505_v27  ;;  %v1527_v0 = vld [vmem:[#allocation5 + $0xd0] ss:$24 sps:$4 sm:$0xff]   ;;  %p1609_p2 = pnand %p1608_p10, %p2172_p1  ;;  %s1613_s13 = scalar_lea.vmem %s1612_s23, 512 }
  0x71   : > { %853 = vmatprep.subr.bf16.mxu1 %v1509_v41  ;;  %990 = vperm.xlu1 %1457, %v1540_v46   ;;  %p1614_p4 = scmp.lt.s32.totalorder %s1044_s16, %s1612_s23  ;;  %p1615_p7 = scmp.lt.s32.totalorder %s1613_s13, %s1607_s22 }
  0x72   : > { %p1610_p3 = pneg %p1609_p2 }
  0x73   : > { %1370 = vmatpush3.bf16.msra.mxu0 %v1466_v17  ;;  %v584_v17 = vrot.slane %v567_v11, %v583_v13  ;;  %p1616_p8 = por %p1615_p7, %p1614_p4 }
  0x74   : > { %880 = vmatprep.subr.bf16.mxu0 %v1472_v21  ;;  %854 = vmatpush1.bf16.msra.mxu1 %v1511_v42 }
  0x75   : > { %921 = vmatprep.subr.bf16.mxu1 %v1517_v45  ;;  %p1617_p11 = pnand %p1616_p8, %p1610_p3 }
  0x76   : > { %1372 = vmatmul.mubr.bf16.vlgmr.msra.gmra.mrb[0].mxu0 %v405_v25 }
  0x77   : > { %881 = vmatpush1.bf16.msra.mxu0 %v1470_v24  ;;  %912 = vmatprep.mubr.bf16.mxu0 %v1779_v47 }
  0x78   : > { %882 = vmatprep.subr.bf16.mxu0 %v1478_v26 }
  0x7b   : > { %883 = vmatpush1.bf16.msra.mxu0 %v1476_v28 }
  0x7c   : > { %884 = vmatprep.subr.bf16.mxu0 %v1484_v29 }
  0x7f   : > { %885 = vmatpush1.bf16.msra.mxu0 %v1482_v30 }
  0x80   : > { %886 = vmatprep.subr.bf16.mxu0 %v1490_v31 }
  0x83   : > { %887 = vmatpush1.bf16.msra.mxu0 %v1488_v32 }
  0x84   : > { %888 = vmatprep.subr.bf16.mxu0 %v1496_v33 }
  0x87   : > { %889 = vmatpush1.bf16.msra.mxu0 %v1494_v34 }
  0x88   : > { %890 = vmatprep.subr.bf16.mxu0 %v1502_v35  ;;  %v587_v35 = vsub.s32 4, %v570_v8 }
  0x8b   : > { %891 = vmatpush1.bf16.msra.mxu0 %v1500_v36  ;;  %v591_v36 = vsub.s32 5, %v570_v8 }
  0x8c   : > { %892 = vmatprep.subr.bf16.mxu0 %v1508_v37  ;;  %v588_v37 = vrot.slane %v567_v11, %v587_v35 }
  0x8f   : > { %893 = vmatpush1.bf16.msra.mxu0 %v1506_v38  ;;  %v592_v38 = vrot.slane %v567_v11, %v591_v36 }
  0x90   : > { %894 = vmatprep.subr.bf16.mxu0 %v1514_v43 }
  0x93   : > { %895 = vmatpush1.bf16.msra.mxu0 %v1512_v44 }
 0x149   : > { %v511_v49 = vpop.f32.mrb[0].mxu0 }
 0x14a   : > { %v512_v50 = vadd.f32 %v1271_v48, %v511_v49  ;;  %v1373_v51 = vpop.f32.mrb[1].mxu0 }
 0x14b   : > { %v514_v52 = vpop.f32.mrb[2].mxu0 }
 0x14c   : > { %v517_v53 = vmax.f32 %v512_v50, 0.0  ;;  %v1374_v54 = vpop.f32.mrb[3].mxu0 }
 0x14e   : > { %v518_v56 = vpack.c.bf16 %v517_v53, %v517_v53 }
 0x150   : > { %872 = vmatmul.mubr.bf16.vlgmr.msra.gmra.mrb[0].mxu1 %v518_v56  ;;  %913 = vmatmul.mubr.bf16.vlgmr.msra.gmra.mrb[4].mxu0 %v518_v56 }
 0x151   : > { %922 = vmatpush1.bf16.msra.mxu1 %v1515_v55  ;;  %953 = vmatprep.mubr.bf16.mxu1 %v1779_v47 }
 0x152   : > { %923 = vmatprep.subr.bf16.mxu1 %v1520_v57 }
 0x155   : > { %924 = vmatpush1.bf16.msra.mxu1 %v1518_v58 }
 0x156   : > { %925 = vmatprep.subr.bf16.mxu1 %v1523_v59 }
 0x159   : > { %926 = vmatpush1.bf16.msra.mxu1 %v1521_v60 }
 0x15a   : > { %927 = vmatprep.subr.bf16.mxu1 %v1526_v61 }
 0x15d   : > { %928 = vmatpush1.bf16.msra.mxu1 %v1524_v62 }
 0x15e   : > { %929 = vmatprep.subr.bf16.mxu1 %v1529_v63 }
 0x161   : > { %930 = vmatpush1.bf16.msra.mxu1 %v1527_v0 }
 0x162   : > { %931 = vmatprep.subr.bf16.mxu1 %v1532_v1 }
 0x165   : > { %932 = vmatpush1.bf16.msra.mxu1 %v1530_v2 }
 0x166   : > { %933 = vmatprep.subr.bf16.mxu1 %v1535_v3 }
 0x169   : > { %934 = vmatpush1.bf16.msra.mxu1 %v1533_v4 }
 0x16a   : > { %935 = vmatprep.subr.bf16.mxu1 %v1538_v5 }
 0x16d   : > { %936 = vmatpush1.bf16.msra.mxu1 %v1536_v6 }
 0x170   : > { %954 = vmatmul.mubr.bf16.vlgmr.msra.gmra.mrb[4].mxu1 %v518_v56 }
 0x223   : > { %v873_v18 = vpop.f32.mrb[0].mxu1  ;;  %v914_v19 = vpop.f32.mrb[4].mxu0 }
 0x224   : > { %v874_v20 = vadd.f32 %v873_v18, %v572_v14  ;;  %v915_v21 = vadd.f32 %v914_v19, %v580_v15  ;;  %v875_v22 = vpop.f32.mrb[1].mxu1  ;;  %v916_v23 = vpop.f32.mrb[5].mxu0 }
 0x225   : > { %v876_v24 = vadd.f32 %v875_v22, %v576_v16  ;;  %v917_v25 = vadd.f32 %v916_v23, %v584_v17  ;;  %v877_v26 = vpop.f32.mrb[2].mxu1  ;;  %v918_v27 = vpop.f32.mrb[6].mxu0 }
 0x226   : > { %v979_v28 = vmul.f32 1.442695, %v915_v21  ;;  %v878_v29 = vpop.f32.mrb[3].mxu1  ;;  %v919_v30 = vpop.f32.mrb[7].mxu0 }
 0x227   : > { %v981_v31 = vmul.f32 1.442695, %v917_v25  ;;  %v962_v32 = vmax.f32 %v874_v20, %v876_v24 }
 0x228   : > { %1541 = vpow2.f32 %v979_v28 }
 0x229   : > { %1543 = vpow2.f32 %v981_v31  ;;  %963 = vmax.xlane.f32.xlu0 %v962_v32 }
 0x232   : > { %v1542_v33 = vpop.eup %1541 }
 0x233   : > { %v1544_v34 = vpop.eup %1543  ;;  %983 = vst [vmem:[%s1984_s27] sm:$0xff] %v1542_v33 }
 0x234   : > { %984 = vst [vmem:[%s1984_s27 + $0x8] sm:$0xff] %v1544_v34 }
 0x243   : > { %v955_v39 = vpop.f32.mrb[4].mxu1 }
 0x244   : > { %v956_v40 = vadd.f32 %v955_v39, %v588_v37  ;;  %v957_v41 = vpop.f32.mrb[5].mxu1 }
 0x245   : > { %v958_v42 = vadd.f32 %v957_v41, %v592_v38  ;;  %v959_v43 = vpop.f32.mrb[6].mxu1 }
 0x246   : > { %997 = vst [vmem:[%s1989_s21] sm:$0xff] %v956_v40  ;;  %v960_v44 = vpop.f32.mrb[7].mxu1 }
 0x247   : > { %998 = vst [vmem:[%s1989_s21 + $0x8] sm:$0xff] %v958_v42 }
 0x2b6   : > { %v964_v45 = vpop.xlane.xlu0 %963 }
 0x2b7   : > { %v965_v46 = vsub.f32 %v874_v20, %v964_v45  ;;  %v966_v47 = vsub.f32 %v876_v24, %v964_v45 }
 0x2b9   : > { %v967_v48 = vmul.f32 1.442695, %v965_v46  ;;  %v969_v49 = vmul.f32 1.442695, %v966_v47 }
 0x2bb   : > { %1545 = vpow2.f32 %v967_v48 }
 0x2bc   : > { %1547 = vpow2.f32 %v969_v49 }
 0x2c5   : > { %v1993_v50 = vpop.eup %1545 }
 0x2c6   : > { %v1995_v51 = vpop.eup %1547 }
 0x2c7   : > { %v971_v52 = vadd.f32 %v1995_v51, %v1993_v50 }
 0x2c9   : > { %972 = vadd.xlane.f32.xlu0 %v971_v52 }
 0x2ca   : > { %1620 = shalt.err (!%p1617_p11)
}
 0x2cb   : > { %s1621_s11 = scalar_lea.hbm %s2007_s29, 256  ;;  %s1625_s28 = scalar_lea.hbm %s2150_s7, 512 }
 0x2cc   : > { %p1622_p13 = scmp.ne.s32.totalorder %s2007_s29, %s1621_s11  ;;  %p1626_p6 = scmp.lt.u32.totalorder %s2007_s29, %s2150_s7 }
 0x2cd   : > { %p1627_p9 = scmp.lt.u32.totalorder %s1625_s28, %s1621_s11  ;;  %p1629_p10 = scmp.lt.u32.totalorder %s1621_s11, %s2007_s29 }
 0x2ce   : > { %p1623_p0 = pnand %p1622_p13, %p2172_p1 }
 0x2cf   : > { %p1628_p12 = por %p1627_p9, %p1626_p6 }
 0x2d0   : > { %p1624_p5 = pneg %p1623_p0 }
 0x2d1   : > { %p1630_p2 = por %p1629_p10, %p1628_p12 }
 0x2d3   : > { %p1631_p3 = pnand %p1630_p2, %p1624_p5 }
 0x2d5   : > { %1634 = shalt.err (!%p1631_p3)
}
 0x2d6   : > { %1384 = dma.vmem_to_hbm [thread:$0]  (%p2172_p1), %s1044_s16, 256, %s2007_s29, %s2010_s17  }
 0x2d7   : > { %s2034_s13 = scalar_lea.hbm %s2152_s9, %s2001_s26  ;;  %s1071_s27 = sshll.u32 %s1989_s21, 4  ;;  %s1072_s27 = int_to_ptr.vmem [resolvable:$true] %s1071_s27 }
 0x2d8   : > { %s1015_s11 = scalar_lea.sflag [#allocation12], %s1978_s15  ;;  %s1635_s24 = scalar_lea.vmem %s1072_s27, 256 }
 0x2d9   : > { %p1636_p4 = scmp.ne.s32.totalorder %s1072_s27, %s1635_s24  ;;  %s1781_s28 = smov [#allocation11]  }
 0x2da   : > { %s1639_s14 = sshll.u32 %s1781_s28, 4  ;;  %s1640_s14 = int_to_ptr.vmem [resolvable:$false] %s1639_s14 }
 0x2db   : > { %p1637_p7 = pnand %p1636_p4, %p2172_p1  ;;  %s1641_s25 = scalar_lea.vmem %s1640_s14, 512 }
 0x2dc   : > { %p1642_p11 = scmp.lt.s32.totalorder %s1072_s27, %s1640_s14  ;;  %p1643_p13 = scmp.lt.s32.totalorder %s1641_s25, %s1635_s24 }
 0x2dd   : > { %p1638_p8 = pneg %p1637_p7 }
 0x2de   : > { %p1644_p0 = por %p1643_p13, %p1642_p11 }
 0x2e0   : > { %p1645_p5 = pnand %p1644_p0, %p1638_p8 }
 0x2e2   : > { %1648 = shalt.err (!%p1645_p5)
}
 0x2e3   : > { %s1649_s21 = scalar_lea.hbm %s2034_s13, 256  ;;  %s1653_s22 = scalar_lea.hbm %s2152_s9, 512 }
 0x2e4   : > { %p1650_p6 = scmp.ne.s32.totalorder %s2034_s13, %s1649_s21  ;;  %p1654_p10 = scmp.lt.u32.totalorder %s2034_s13, %s2152_s9 }
 0x2e5   : > { %p1655_p2 = scmp.lt.u32.totalorder %s1653_s22, %s1649_s21  ;;  %p1657_p4 = scmp.lt.u32.totalorder %s1649_s21, %s2034_s13 }
 0x2e6   : > { %p1651_p9 = pnand %p1650_p6, %p2172_p1 }
 0x2e7   : > { %p1656_p3 = por %p1655_p2, %p1654_p10 }
 0x2e8   : > { %p1652_p12 = pneg %p1651_p9 }
 0x2e9   : > { %p1658_p7 = por %p1657_p4, %p1656_p3 }
 0x2eb   : > { %p1659_p8 = pnand %p1658_p7, %p1652_p12 }
 0x2ed   : > { %1662 = shalt.err (!%p1659_p8)
}
 0x2ee   : > { %1386 = dma.vmem_to_hbm [thread:$0]  (%p2172_p1), %s1072_s27, 256, %s2034_s13, %s1015_s11   ;;  %v991_v55 = vpop.permute.xlu1 %990 }
 0x2ef   : > { %s373_s24 = scalar_lea.vmem [#allocation7], %s1981_s18  ;;  %s2057_s25 = scalar_lea.vmem [#allocation10], %s1981_s18 }
 0x2f0   : > { %s1029_s14 = sshll.u32 %s373_s24, 4  ;;  %s1057_s21 = sshll.u32 %s2057_s25, 4  ;;  %s2068_s14 = int_to_ptr.vmem [resolvable:$true] %s1029_s14  ;;  %s2070_s21 = int_to_ptr.vmem [resolvable:$true] %s1057_s21 }
 0x2f1   : > { %s2066_s13 = scalar_lea.hbm %s2149_s6, %s2001_s26  ;;  %s2076_s11 = scalar_lea.hbm %s2151_s8, %s2001_s26 }
 0x2f2   : > { %s1000_s22 = scalar_lea.sflag [#allocation4], %s1978_s15  ;;  %s1663_s23 = scalar_lea.vmem %s2068_s14, 256 }
 0x2f3   : > { %p1664_p11 = scmp.ne.s32.totalorder %s2068_s14, %s1663_s23  ;;  %s1782_s28 = smov [#allocation7]  }
 0x2f4   : > { %s1667_s29 = sshll.u32 %s1782_s28, 4  ;;  %s1668_s29 = int_to_ptr.vmem [resolvable:$false] %s1667_s29 }
 0x2f5   : > { %p1665_p13 = pnand %p1664_p11, %p2172_p1  ;;  %s1669_s16 = scalar_lea.vmem %s1668_s29, 512 }
 0x2f6   : > { %p1670_p5 = scmp.lt.s32.totalorder %s2068_s14, %s1668_s29  ;;  %p1671_p6 = scmp.lt.s32.totalorder %s1669_s16, %s1663_s23 }
 0x2f7   : > { %p1666_p0 = pneg %p1665_p13 }
 0x2f8   : > { %p1672_p9 = por %p1671_p6, %p1670_p5 }
 0x2fa   : > { %p1673_p12 = pnand %p1672_p9, %p1666_p0 }
 0x356   : > { %v973_v53 = vpop.xlane.xlu0 %972 }
 0x357   : > { %1549 = vrcp.f32 %v973_v53 }
 0x361   : > { %v1550_v54 = vpop.eup %1549 }
 0x362   : > { %v975_v56 = vmul.f32 %v1550_v54, %v1993_v50  ;;  %v976_v57 = vmul.f32 %v1550_v54, %v1995_v51 }
 0x364   : > { %977 = vst [vmem:[%s373_s24] sm:$0xff] %v975_v56  ;;  %978 = vst [vmem:[%s373_s24 + $0x8] sm:$0xff] %v976_v57  ;;  %v993_v58 = vmul.f32 %v991_v55, %v975_v56  ;;  %v994_v59 = vmul.f32 %v991_v55, %v976_v57 }
 0x365   : > { %1676 = shalt.err (!%p1673_p12)
}
 0x366   : > { %s1677_s15 = scalar_lea.hbm %s2066_s13, 256  ;;  %s1681_s18 = scalar_lea.hbm %s2149_s6, 512 }
 0x367   : > { %p1678_p10 = scmp.ne.s32.totalorder %s2066_s13, %s1677_s15  ;;  %p1682_p4 = scmp.lt.u32.totalorder %s2066_s13, %s2149_s6 }
 0x368   : > { %p1683_p7 = scmp.lt.u32.totalorder %s1681_s18, %s1677_s15  ;;  %p1685_p11 = scmp.lt.u32.totalorder %s1677_s15, %s2066_s13 }
 0x369   : > { %p1679_p2 = pnand %p1678_p10, %p2172_p1 }
 0x36a   : > { %p1684_p8 = por %p1683_p7, %p1682_p4 }
 0x36b   : > { %p1680_p3 = pneg %p1679_p2 }
 0x36c   : > { %p1686_p13 = por %p1685_p11, %p1684_p8 }
 0x36e   : > { %p1687_p0 = pnand %p1686_p13, %p1680_p3 }
 0x370   : > { %1690 = shalt.err (!%p1687_p0)
}
 0x371   : > { %1383 = dma.vmem_to_hbm [thread:$0]  (%p2172_p1), %s2068_s14, 256, %s2066_s13, %s1000_s22   ;;  %995 = vst [vmem:[%s2057_s25] sm:$0xff] %v993_v58  ;;  %996 = vst [vmem:[%s2057_s25 + $0x8] sm:$0xff] %v994_v59 }
 0x372   : > { %s1691_s23 = scalar_lea.vmem %s2070_s21, 256  ;;  %s1783_s29 = smov [#allocation10]  }
 0x373   : > { %p1692_p5 = scmp.ne.s32.totalorder %s2070_s21, %s1691_s23  ;;  %s1695_s16 = sshll.u32 %s1783_s29, 4  ;;  %s1696_s16 = int_to_ptr.vmem [resolvable:$false] %s1695_s16 }
 0x374   : > { %s1697_s15 = scalar_lea.vmem %s1696_s16, 512  ;;  %p1698_p12 = scmp.lt.s32.totalorder %s2070_s21, %s1696_s16 }
 0x375   : > { %p1693_p6 = pnand %p1692_p5, %p2172_p1  ;;  %p1699_p10 = scmp.lt.s32.totalorder %s1697_s15, %s1691_s23 }
 0x377   : > { %p1694_p9 = pneg %p1693_p6  ;;  %p1700_p2 = por %p1699_p10, %p1698_p12 }
 0x379   : > { %p1701_p3 = pnand %p1700_p2, %p1694_p9 }
 0x37b   : > { %1704 = shalt.err (!%p1701_p3)
}
 0x37c   : > { %s1705_s14 = scalar_lea.hbm %s2076_s11, 256  ;;  %s1709_s22 = scalar_lea.hbm %s2151_s8, 512 }
 0x37d   : > { %p1706_p4 = scmp.ne.s32.totalorder %s2076_s11, %s1705_s14  ;;  %p1710_p11 = scmp.lt.u32.totalorder %s2076_s11, %s2151_s8 }
 0x37e   : > { %p1711_p13 = scmp.lt.u32.totalorder %s1709_s22, %s1705_s14  ;;  %p1713_p5 = scmp.lt.u32.totalorder %s1705_s14, %s2076_s11 }
 0x37f   : > { %p1707_p7 = pnand %p1706_p4, %p2172_p1 }
 0x380   : > { %p1712_p0 = por %p1711_p13, %p1710_p11 }
 0x381   : > { %p1708_p8 = pneg %p1707_p7 }
 0x382   : > { %p1714_p6 = por %p1713_p5, %p1712_p0 }
 0x384   : > { %p1715_p9 = pnand %p1714_p6, %p1708_p8 }
 0x386   : > { %1718 = shalt.err (!%p1715_p9)
}
 0x387   : > { %1385 = dma.vmem_to_hbm [thread:$0]  (%p2172_p1), %s2070_s21, 256, %s2076_s11, %s2010_s17  }
 0x388 PF: > { %p1415_p12 = scmp.ge.s32.totalorder %s1769_s12, 2  ;;  %s1083_s18 = sand.u32 1, %s1757_s30  }
 0x389   : > { %p2173_p10 = scmp.ne.s32.totalorder %s2164_s20, 0  ;;  %s1084_s27 = scalar_lea.sflag [#allocation4], %s1083_s18 }
 0x38b   : > { %p1399_p2 = pnand %p1415_p12, %p2173_p10 }
 0x38d   : > { %1744 = dma.done.wait (!%p1399_p2), %s1084_s27, 256  }
 0x38e   : > { %1746 = vsyncadd (!%p1399_p2), %s1084_s27, 4294967040  ;;  %s2174_s28 = sadd.s32 4294967294, %s1769_s12  }
 0x38f   : > { %s1092_s23 = sand.u32 1, %s2174_s28  }
 0x390   : > { %s1093_s29 = scalar_lea.sflag [#allocation9], %s1092_s23 }
 0x391   : > { %1748 = dma.done.wait (!%p1399_p2), %s1093_s29, 512  }
 0x392   : > { %1750 = vsyncadd (!%p1399_p2), %s1093_s29, 4294966784  ;;  %s1111_s19 = scalar_lea.sflag [#allocation12], %s1083_s18 }
 0x393   : > { %1752 = dma.done.wait (!%p1399_p2), %s1111_s19, 256  }
 0x394   : > { %1754 = vsyncadd (!%p1399_p2), %s1111_s19, 4294967040  ;;  %s2175_s12 = sld [smem:[#allocation19_spill]]  ;;  %s2176_s17 = sld [smem:[#allocation18_spill]] }
 0x395   : > { %s2177_s11 = sld [smem:[#allocation20_spill]]  ;;  %s2178_s30 = smov %s1761_s10 }
 0x39a   : > { %p28_p1 = scmp.ge.s32.totalorder %s2175_s12, 4   ;;  %s2179_s10 = smov %s2176_s17 }
 0x39c   :  { %30 = sbr.rel (!%p28_p1) target bundleno = 9 (0x9), region = 140 }
 0x3a3   :  { %1116 = vsyncpa [#allocation3], 1 }
 0x3a4   :  { %1118 = vsyncpa [#allocation3 + $0x1], 1 }
 0x3a5   :  { %1119 = vsyncpa [#allocation6], 1 }
 0x3a6   :  { %1120 = vsyncpa [#allocation4], 1 }
 0x3a7   :  { %1122 = vsyncpa [#allocation4 + $0x1], 1 }
 0x3a8   :  { %1123 = vsyncpa [#allocation9], 1 }
 0x3a9   :  { %1125 = vsyncpa [#allocation9 + $0x1], 1 }
 0x3aa   :  { %1126 = vsyncpa [#allocation12], 1 }
 0x3ab   :  { %1128 = vsyncpa [#allocation12 + $0x1], 1 }

</bundles_post_ra>
